<compile_context>
chip_gen: v7x
topology: tpu7x:2x2x1
jax: 0.10.0
libtpu: 0.0.40
codegen_flags: <defaults>
</compile_context>

<pallas_src>
import jax
import jax.numpy as jnp
from jax import lax
from jax.experimental import pallas as pl
from jax.experimental.pallas import tpu as pltpu


_LANES = 512  # lane-dense output slab width (multiple of 128)


def _uniform_policy_kernel(seed_ref, out_ref):
    tb, lanes = out_ref.shape
    pid = pl.program_id(0)

    # Unique global flat index for every element of this tile (int32).
    row = lax.broadcasted_iota(jnp.int32, (tb, lanes), 0)
    col = lax.broadcasted_iota(jnp.int32, (tb, lanes), 1)
    idx = (pid * tb + row) * lanes + col

    # Mix the seed in (golden-ratio constant; int32 wraps two's-complement).
    mixed = idx + seed_ref[0] * jnp.int32(-1640531527)  # 0x9E3779B9 as int32

    # Stateless murmur/splitmix-style finalizer in uint32.
    x = lax.bitcast_convert_type(mixed, jnp.uint32)
    x = x ^ (x >> 16)
    x = x * jnp.uint32(0x7FEB352D)
    x = x ^ (x >> 15)
    x = x * jnp.uint32(0x846CA68B)
    x = x ^ (x >> 16)

    # Top 23 bits -> mantissa of a float in [2, 4); subtract 3 -> [-1, 1).
    mant = (x >> 9) | jnp.uint32(0x40000000)
    f = lax.bitcast_convert_type(mant, jnp.float32)
    out_ref[...] = f - 3.0


def uniform_policy_forward(states, dim_action, seed=0):
    """JAX/Pallas equivalent of UniformPolicy.forward.

    Args:
        states: array of shape [..., state_dim] (only the shape is used).
        dim_action: int, action dimension.
        seed: int, PRNG seed. Vary it per call to get fresh samples
            (deterministic substitute for torch's advancing global RNG).

    Returns:
        float32 array of shape states.shape[:-1] + (dim_action,), uniform in
        [-1, 1).
    """
    lead_shape = states.shape[:-1]
    total = dim_action
    for d in lead_shape:
        total *= int(d)

    rows = -(-total // _LANES)                       # ceil(total / LANES)
    tb = min(256, ((rows + 7) // 8) * 8)             # rows per tile, mult of 8
    rows_padded = -(-rows // tb) * tb
    grid = (rows_padded // tb,)

    seed_arr = jnp.asarray([seed], dtype=jnp.int32)

    slab = pl.pallas_call(
        _uniform_policy_kernel,
        out_shape=jax.ShapeDtypeStruct((rows_padded, _LANES), jnp.float32),
        grid_spec=pltpu.PrefetchScalarGridSpec(
            num_scalar_prefetch=1,
            grid=grid,
            in_specs=[],
            out_specs=pl.BlockSpec((tb, _LANES), lambda i, seed_ref: (i, 0)),
        ),
        compiler_params=pltpu.CompilerParams(
            dimension_semantics=("parallel",),
        ),
    )(seed_arr)

    flat = jnp.reshape(slab, (-1,))[:total]
    return jnp.reshape(flat, lead_shape + (dim_action,))


if __name__ == "__main__":
    key = jax.random.PRNGKey(0)
    batch, state_dim, dim_action = 2, 8, 4

    # Deterministic example states (values are irrelevant to the forward).
    states = jax.random.normal(key, (batch, state_dim), dtype=jnp.float32)

    actions = uniform_policy_forward(states, dim_action, seed=0)
    actions = jax.block_until_ready(actions)

    assert actions.shape == (batch, dim_action), actions.shape
    assert actions.dtype == jnp.float32, actions.dtype
    assert bool(jnp.all(actions >= -1.0)) and bool(jnp.all(actions < 1.0))

    # Different seeds give different samples.
    actions2 = jax.block_until_ready(
        uniform_policy_forward(states, dim_action, seed=1)
    )
    assert bool(jnp.any(actions2 != actions))

    print("KERNEL_OK")
</pallas_src>

<mosaic_0001>
module attributes {stable_mosaic.version = 11 : i64} {
  func.func @_uniform_policy_kernel(%arg0: i32, %arg1: memref<1xi32, #tpu.memory_space<smem>>, %arg2: memref<8x512xf32, #tpu.memory_space<vmem>>) attributes {dimension_semantics = [#tpu.dimension_semantics<parallel>], iteration_bounds = array<i64: 1>, scalar_prefetch = 1 : i64, scratch_operands = 0 : i64, tpu.core_type = #tpu.core_type<tc>, window_params = [{transform_indices = @transform_0, window_bounds = array<i64: 8, 512>}]} {
    %0 = tpu.iota {dimensions = array<i32: 0>} : vector<8x512xi32>
    %1 = tpu.iota {dimensions = array<i32: 1>} : vector<8x512xi32>
    %c8_i32 = arith.constant 8 : i32
    %2 = arith.muli %arg0, %c8_i32 : i32
    %3 = vector.broadcast %2 : i32 to vector<8x512xi32>
    %4 = arith.addi %3, %0 : vector<8x512xi32>
    %c512_i32 = arith.constant 512 : i32
    %5 = vector.broadcast %c512_i32 : i32 to vector<8x512xi32>
    %6 = arith.muli %4, %5 : vector<8x512xi32>
    %7 = arith.addi %6, %1 : vector<8x512xi32>
    %c0 = arith.constant 0 : index
    %8 = memref.load %arg1[%c0] : memref<1xi32, #tpu.memory_space<smem>>
    %c-1640531527_i32 = arith.constant -1640531527 : i32
    %9 = arith.muli %8, %c-1640531527_i32 : i32
    %10 = vector.broadcast %9 : i32 to vector<8x512xi32>
    %11 = arith.addi %7, %10 : vector<8x512xi32>
    %12 = tpu.bitcast %11 : vector<8x512xi32> -> vector<8x512xi32>
    %c16_i32 = arith.constant 16 : i32
    %13 = vector.broadcast %c16_i32 : i32 to vector<8x512xi32>
    %14 = arith.shrui %12, %13 : vector<8x512xi32>
    %15 = arith.xori %12, %14 : vector<8x512xi32>
    %c2146121005_i32 = arith.constant 2146121005 : i32
    %16 = vector.broadcast %c2146121005_i32 : i32 to vector<8x512xi32>
    %17 = arith.muli %15, %16 : vector<8x512xi32>
    %c15_i32 = arith.constant 15 : i32
    %18 = vector.broadcast %c15_i32 : i32 to vector<8x512xi32>
    %19 = arith.shrui %17, %18 : vector<8x512xi32>
    %20 = arith.xori %17, %19 : vector<8x512xi32>
    %c-2073254261_i32 = arith.constant -2073254261 : i32
    %21 = vector.broadcast %c-2073254261_i32 : i32 to vector<8x512xi32>
    %22 = arith.muli %20, %21 : vector<8x512xi32>
    %c16_i32_0 = arith.constant 16 : i32
    %23 = vector.broadcast %c16_i32_0 : i32 to vector<8x512xi32>
    %24 = arith.shrui %22, %23 : vector<8x512xi32>
    %25 = arith.xori %22, %24 : vector<8x512xi32>
    %c9_i32 = arith.constant 9 : i32
    %26 = vector.broadcast %c9_i32 : i32 to vector<8x512xi32>
    %27 = arith.shrui %25, %26 : vector<8x512xi32>
    %c1073741824_i32 = arith.constant 1073741824 : i32
    %28 = vector.broadcast %c1073741824_i32 : i32 to vector<8x512xi32>
    %29 = arith.ori %27, %28 : vector<8x512xi32>
    %30 = tpu.bitcast %29 : vector<8x512xi32> -> vector<8x512xf32>
    %cst = arith.constant 3.000000e+00 : f32
    %31 = vector.broadcast %cst : f32 to vector<8x512xf32>
    %32 = arith.subf %30, %31 : vector<8x512xf32>
    %c0_1 = arith.constant 0 : index
    %c0_2 = arith.constant 0 : index
    %33 = vector.load %arg2[%c0_1, %c0_2] : memref<8x512xf32, #tpu.memory_space<vmem>>, vector<8x512xf32>
    tpu.vector_store %arg2[%c0_1, %c0_2], %32 {strides = array<i32>} : memref<8x512xf32, #tpu.memory_space<vmem>>, vector<8x512xf32>,
    return
  }
  func.func @transform_0(%arg0: i32, %arg1: memref<1xi32, #tpu.memory_space<smem>>) -> (i32, i32) {
    %c0_i32 = arith.constant 0 : i32
    %c0_i32_0 = arith.constant 0 : i32
    return %arg0, %c0_i32 : i32, i32
  }
}

</mosaic_0001>

<bundles_post_ra>
// kernel: tpu_custom_call.1
= control target key start
LH: loop header
LB: loop body
LE: loop exit
PB: predicated region body
PF: predicated region fallthrough
CT: control target
= control target key end

     0   :  { %v8_v0 = vlaneseq  ;;  %s151_s0 = inlined_call_operand.<no memory space> [shape: s32[1], index: 0, kind: input, shape index: {}]   ;;  %s152_s1 = inlined_call_operand.hbm [shape: f32[8,512], index: 1, kind: output, shape index: {}]  }
   0x1   :  { %7 = vsyncpa [#allocation5], 0  ;;  %s24_s8 = smul.u32 2654435769, %s151_s0  ;;  %s125_s0 = smov [#allocation4]  }
   0x2   :  { %v9_v1 = vshrl.u32 %v8_v0, 7  ;;  %v11_v2 = vand.u32 127, %v8_v0  ;;  %s88_s9 = sshll.u32 %s125_s0, 4  ;;  %s89_s9 = int_to_ptr.vmem [resolvable:$true] %s88_s9 }
   0x3   :  { %v25_v7 = vstv %s24_s8  ;;  %s101_s10 = scalar_lea.vmem %s89_s9, 512  ;;  %p106_p1 = scmp.lt.s32.totalorder %s89_s9, %s89_s9 }
   0x4   :  { %v18_v3 = vmul.u32 512, %v9_v1  ;;  %v12_v4 = vadd.s32 128, %v11_v2  ;;  %v13_v5 = vadd.s32 256, %v11_v2  ;;  %v14_v6 = vadd.s32 384, %v11_v2  ;;  %p102_p0 = scmp.ne.s32.totalorder %s89_s9, %s101_s10  ;;  %p107_p2 = scmp.lt.s32.totalorder %s101_s10, %s101_s10 }
   0x6   :  { %v19_v8 = vadd.s32 %v18_v3, %v11_v2  ;;  %v20_v9 = vadd.s32 %v18_v3, %v12_v4  ;;  %v21_v10 = vadd.s32 %v18_v3, %v13_v5  ;;  %v22_v11 = vadd.s32 %v18_v3, %v14_v6  ;;  %p108_p3 = por %p107_p2, %p106_p1 }
   0x8   :  { %v26_v12 = vadd.s32 %v25_v7, %v19_v8  ;;  %v27_v13 = vadd.s32 %v25_v7, %v20_v9  ;;  %v28_v14 = vadd.s32 %v25_v7, %v21_v10  ;;  %v29_v15 = vadd.s32 %v25_v7, %v22_v11  ;;  %p109_p4 = pnand %p108_p3, %p102_p0 }
   0xa   :  { %v30_v16 = vshrl.u32 %v26_v12, 16  ;;  %v31_v17 = vshrl.u32 %v27_v13, 16  ;;  %v32_v18 = vshrl.u32 %v28_v14, 16  ;;  %v33_v19 = vshrl.u32 %v29_v15, 16 }
   0xc   :  { %v34_v20 = vxor.u32 %v30_v16, %v26_v12  ;;  %v35_v21 = vxor.u32 %v31_v17, %v27_v13  ;;  %v36_v22 = vxor.u32 %v32_v18, %v28_v14  ;;  %v37_v23 = vxor.u32 %v33_v19, %v29_v15 }
   0xe   :  { %v38_v24 = vmul.u32 2146121005, %v34_v20  ;;  %v39_v25 = vmul.u32 2146121005, %v35_v21 }
   0xf   :  { %v40_v26 = vmul.u32 2146121005, %v36_v22  ;;  %v41_v27 = vmul.u32 2146121005, %v37_v23 }
  0x10   :  { %v42_v28 = vshrl.u32 %v38_v24, 15  ;;  %v43_v29 = vshrl.u32 %v39_v25, 15 }
  0x11   :  { %v44_v30 = vshrl.u32 %v40_v26, 15  ;;  %v45_v31 = vshrl.u32 %v41_v27, 15 }
  0x12   :  { %v46_v32 = vxor.u32 %v42_v28, %v38_v24  ;;  %v47_v33 = vxor.u32 %v43_v29, %v39_v25 }
  0x13   :  { %v48_v34 = vxor.u32 %v44_v30, %v40_v26  ;;  %v49_v35 = vxor.u32 %v45_v31, %v41_v27 }
  0x14   :  { %v50_v36 = vmul.u32 2221713035, %v46_v32  ;;  %v51_v37 = vmul.u32 2221713035, %v47_v33 }
  0x15   :  { %v52_v38 = vmul.u32 2221713035, %v48_v34  ;;  %v53_v39 = vmul.u32 2221713035, %v49_v35 }
  0x16   :  { %v54_v40 = vshrl.u32 %v50_v36, 16  ;;  %v55_v41 = vshrl.u32 %v51_v37, 16 }
  0x17   :  { %v56_v42 = vshrl.u32 %v52_v38, 16  ;;  %v57_v43 = vshrl.u32 %v53_v39, 16 }
  0x18   :  { %v58_v44 = vxor.u32 %v54_v40, %v50_v36  ;;  %v59_v45 = vxor.u32 %v55_v41, %v51_v37 }
  0x19   :  { %v60_v46 = vxor.u32 %v56_v42, %v52_v38  ;;  %v61_v47 = vxor.u32 %v57_v43, %v53_v39 }
  0x1a   :  { %v62_v48 = vshrl.u32 %v58_v44, 9  ;;  %v63_v49 = vshrl.u32 %v59_v45, 9 }
  0x1b   :  { %v64_v50 = vshrl.u32 %v60_v46, 9  ;;  %v65_v51 = vshrl.u32 %v61_v47, 9 }
  0x1c   :  { %v66_v52 = vor.u32 1073741824, %v62_v48  ;;  %v67_v53 = vor.u32 1073741824, %v63_v49 }
  0x1d   :  { %v68_v54 = vor.u32 1073741824, %v64_v50  ;;  %v69_v55 = vor.u32 1073741824, %v65_v51 }
  0x1e   :  { %v96_v56 = vadd.f32 -3.0, %v66_v52  ;;  %v97_v57 = vadd.f32 -3.0, %v67_v53 }
  0x1f   :  { %v98_v58 = vadd.f32 -3.0, %v68_v54  ;;  %v99_v59 = vadd.f32 -3.0, %v69_v55 }
  0x20   :  { %78 = vst [vmem:[#allocation4] sm:$0xff] %v96_v56  ;;  %79 = vst [vmem:[#allocation4 + $0x8] sm:$0xff] %v97_v57 }
  0x21   :  { %80 = vst [vmem:[#allocation4 + $0x10] sm:$0xff] %v98_v58  ;;  %81 = vst [vmem:[#allocation4 + $0x18] sm:$0xff] %v99_v59 }
  0x22   :  { %112 = shalt.err (!%p109_p4)
}
  0x23   :  { %s113_s13 = scalar_lea.hbm %s152_s1, 512 }
  0x24   :  { %p114_p5 = scmp.ne.s32.totalorder %s152_s1, %s113_s13  ;;  %p117_p6 = scmp.lt.u32.totalorder %s113_s13, %s152_s1 }
  0x26   :  { %p119_p7 = pnand %p117_p6, %p114_p5 }
  0x28   :  { %122 = shalt.err (!%p119_p7)
}
  0x29   :  { %91 = dma.vmem_to_hbm [thread:$0]  %s89_s9, 512, %s152_s1, [#allocation5]  }
  0x2a   :  { %123 = dma.done.wait [#allocation5], 512  }
  0x2b   :  { %124 = vsyncadd [#allocation5], 4294966784 }
  0x2c   :  { %95 = vsyncpa [#allocation5], 1 }

</bundles_post_ra>
